<compile_context>
chip_gen: v5e
topology: v5e:2x2
jax: 0.10.0
libtpu: 0.0.40
codegen_flags: <defaults>
</compile_context>

<pallas_src>
import functools

import numpy as np
import jax
import jax.numpy as jnp
from jax import lax
from jax.experimental import pallas as pl
from jax.experimental.pallas import tpu as pltpu

F32 = jnp.float32
HID = 32          # hidden width of both REGNNs
BIG = 1e9         # 1e9 sentinel used by the reference box projections
LANES = 128       # lane-padded width of the packed weight slab

# row layout of one layer inside the packed weight slab (8-aligned blocks)
ROW_WP0 = 0       # rows 0:5   (5, 64)  [w00 | w01]      REGNN-0 input taps
ROW_WP1 = 8       # rows 8:40  (32, 4)  [w10 | w11]      REGNN-0 output taps
ROW_VSW = 40      # rows 40:40+K (K,64) [v00_S | v01_S]  REGNN-1 input taps (HW part)
ROW_VXW = 48      # rows 48:53 (5, 64)  [v00_X | v01_X]  REGNN-1 input taps (x part)
ROW_VOW = 56      # rows 56:88 (32,10)  [v10 | v11]      REGNN-1 output taps
N_ROWS = 88


def _dg(a, b, a_dim, b_dim):
    """2-D dot_general contracting a's axis a_dim with b's axis b_dim."""
    return lax.dot_general(
        a, b, (((a_dim,), (b_dim,)), ((), ())), preferred_element_type=F32)


# TODO(synk): HWGCN is not provided in the reference; it is implemented here as a
# standard order-1 REGNN graph filter  Z_{l+1} = act( Z_l W_{l,0} + S Z_l W_{l,1} )
# with ReLU on the hidden layer and a linear output layer.
def fused_pocs_kernel(hw_ref, diag_ref, cmean_ref, x0_ref, w_ref, out_ref, *,
                      num_itr, K, alpha_k, vartheta, Pmax, nu3, tgamma):
    S = hw_ref[0]            # (K, K)  graph shift for this batch element
    diag_s = diag_ref[0]     # (1, K)  diag(HW), host-precomputed
    cmean = cmean_ref[0]     # (K, 1)  column-mean of HW, host-precomputed
    x = x0_ref[0]            # (5, K)  POCS state, carried in vregs

    v_nu = 1.0 - 1.0 / (1.0 + nu3) ** 2
    v_gamma = 1.0 - 1.0 / (1.0 + tgamma) ** 2
    inv_k = 1.0 / K

    # Row-index mask and the layer-independent box bounds, hoisted out of the loop.
    rid = lax.broadcasted_iota(jnp.int32, (5, K), 0)
    low_a = jnp.where(rid == 1, nu3, 0.0)        # x = max(x, low_a)
    up_b = jnp.where(rid == 2, tgamma, BIG)      # x = min(x, up_b)
    low_c = jnp.where(rid == 3, v_nu, 0.0)       # x = max(x, low_c)
    up_d = jnp.where(rid == 3, v_gamma, BIG)     # x = min(x, up_d)
    is_r0 = rid == 0
    is_r1 = rid == 1
    is_r4 = rid == 4

    # Statically unrolled unfold layers: state stays in registers between layers,
    # weights are read from the resident slab (zero per-layer DMAs).
    for l in range(num_itr):
        wp0 = w_ref[l, ROW_WP0:ROW_WP0 + 5, :]          # (5, 128)
        wp1 = w_ref[l, ROW_WP1:ROW_WP1 + HID, :]        # (32, 128)
        vsw = w_ref[l, ROW_VSW:ROW_VSW + K, :]          # (K, 128)
        vxw = w_ref[l, ROW_VXW:ROW_VXW + 5, :]          # (5, 128)
        vow = w_ref[l, ROW_VOW:ROW_VOW + HID, 0:10]     # (32, 10)

        # ---------- REGNN 0 on node features X = x^T  (K, 5) ----------
        xw = _dg(x, wp0, 0, 0)                                               # (K, 128)
        h = jnp.maximum(xw[:, :HID] + _dg(S, xw[:, HID:2 * HID], 1, 0), 0.0)  # (K, 32)
        hz = _dg(h, wp1, 1, 0)                                               # (K, 128)
        # lbd = relu(mean_k(h@w10 + S @ (h@w11))).  The S-tap is folded into a
        # VPU multiply + sublane reduce via the host column-mean of S instead of
        # a near-empty (K,K)@(K,2) MXU op inside the layer loop.
        lbd = jnp.maximum(
            jnp.mean(hz[:, 0:2], axis=0, keepdims=True)
            + jnp.sum(cmean * hz[:, 2:4], axis=0, keepdims=True), 0.0)       # (1, 2)
        lbd0 = lbd[:, 0:1]
        lbd1 = lbd[:, 1:2]

        # ---------- gradient-style updates on rows 1 and 4 (kept in vregs) ----------
        r1 = x[1:2, :]                                                       # (1, K)
        d1 = lbd0 * (alpha_k / (1.0 + r1))                                   # (1, K)
        d4 = lbd1 * (alpha_k * vartheta)                                     # (1, 1)
        xg = x + jnp.where(is_r1, -d1, 0.0) + jnp.where(is_r4, d4, 0.0)      # (5, K)

        # ---------- REGNN 1 on features [S | X] (concat avoided via split taps) ----------
        fv = _dg(S, vsw, 1, 0) + _dg(xg, vxw, 0, 0)                          # (K, 128)
        h2 = jnp.maximum(fv[:, :HID] + _dg(S, fv[:, HID:2 * HID], 1, 0), 0.0)  # (K, 32)
        hz2_t = _dg(vow, h2, 0, 1)                                           # (10, K)
        tilde = hz2_t[0:5, :] + _dg(hz2_t[5:10, :], S, 1, 1)                 # (5, K) = tilde_x^T
        xp = xg + tilde

        # ---------- proj_C8 : sum of the first K entries (row 0) vs Pmax ----------
        fproj = jnp.sum(xp[0:1, :], axis=1, keepdims=True) - Pmax            # (1, 1)
        corr = jnp.where(fproj > 0.0, fproj * inv_k, 0.0)                    # (1, 1)
        xp = xp - jnp.where(is_r0, corr, 0.0)

        # ---------- box projections (exact reference max/min sequence, masked) ----------
        xp = jnp.maximum(xp, low_a)
        xp = jnp.minimum(xp, up_b)
        xp = jnp.maximum(xp, low_c)
        xp = jnp.minimum(xp, up_d)
        x = xp   # next-layer carry stays in registers

    # ---------- epilogue: final ReLU + constraint residuals, ONE coalesced store ----------
    o = jnp.maximum(x, 0.0)                                                  # (5, K)
    o0 = o[0:1, :]
    o1 = o[1:2, :]
    o2 = o[2:3, :]
    o3 = o[3:4, :]
    f5 = 1.0 - 1.0 / (1.0 + o2) ** 2 - o3
    f6 = jnp.sqrt(o3) - o[4:5, :]
    tmp_top = o0 * diag_s                                                    # (1, K)
    # Off-diagonal weighted column sum without materializing S*(1-eye).  This single
    # (1,K)@(K,K) runs once per batch element in the epilogue (off the layer loop).
    tmp_down = _dg(o0, S, 1, 0) - tmp_top + 1.0                              # (1, K)
    f4 = tmp_top - tmp_down * o2
    f2 = o1 * tmp_down - tmp_top
    out_ref[0] = jnp.concatenate([o, f5, f6, f4, f2], axis=0)                # (9, K) single store


def pack_weight_slab(params, num_itr, K):
    """Fuse both graph-filter taps of every GCN layer and pack ALL layers into a
    single lane-padded (num_itr, N_ROWS, 128) slab (one resident DMA total)."""
    slab = np.zeros((num_itr, N_ROWS, LANES), dtype=np.float32)
    for l, p in enumerate(params):
        w00, w01, w10, w11, v00, v01, v10, v11 = [np.asarray(a, dtype=np.float32) for a in p]
        slab[l, ROW_WP0:ROW_WP0 + 5, 0:HID] = w00
        slab[l, ROW_WP0:ROW_WP0 + 5, HID:2 * HID] = w01
        slab[l, ROW_WP1:ROW_WP1 + HID, 0:2] = w10
        slab[l, ROW_WP1:ROW_WP1 + HID, 2:4] = w11
        slab[l, ROW_VSW:ROW_VSW + K, 0:HID] = v00[:K]
        slab[l, ROW_VSW:ROW_VSW + K, HID:2 * HID] = v01[:K]
        slab[l, ROW_VXW:ROW_VXW + 5, 0:HID] = v00[K:]
        slab[l, ROW_VXW:ROW_VXW + 5, HID:2 * HID] = v01[K:]
        slab[l, ROW_VOW:ROW_VOW + HID, 0:5] = v10
        slab[l, ROW_VOW:ROW_VOW + HID, 5:10] = v11
    return jnp.asarray(slab)


def power_control_net(HW, x0_tmp, nu3_val, tilde_gamma_val,
                      A9, A1, A3, A7, b7, A10, num_itr, *,
                      params, K, alpha_k, vartheta, Pmax):
    """JAX/Pallas equivalent of PowerControlNet.forward.  All num_itr unfold layers
    run inside a single kernel invocation per batch element (grid=(B,), 'parallel'
    so v7x's two TensorCores split the batch).  A9/A1/A3/A7/b7/A10 are accepted for
    signature parity but unused (they are unused in the reference forward too)."""
    del A9, A1, A3, A7, b7, A10
    assert K <= 8, "packed weight-slab row layout assumes K <= 8"
    B = HW.shape[0]
    HW = HW.astype(F32)
    x5 = x0_tmp.reshape(B, 5, K).astype(F32)

    # Host-side precompute: diag(HW) as a (1,K) row, column-mean(HW) as a (K,1) column.
    diag_hw = jnp.diagonal(HW, axis1=1, axis2=2).reshape(B, 1, K).astype(F32)
    cmean_hw = jnp.mean(HW, axis=1).reshape(B, K, 1).astype(F32)
    w_slab = pack_weight_slab(params, num_itr, K)

    kernel = functools.partial(
        fused_pocs_kernel, num_itr=num_itr, K=K, alpha_k=alpha_k,
        vartheta=vartheta, Pmax=Pmax, nu3=nu3_val, tgamma=tilde_gamma_val)

    out = pl.pallas_call(
        kernel,
        out_shape=jax.ShapeDtypeStruct((B, 9, K), F32),
        grid_spec=pltpu.PrefetchScalarGridSpec(
            num_scalar_prefetch=0,
            grid=(B,),
            in_specs=[
                pl.BlockSpec((1, K, K), lambda b: (b, 0, 0)),    # HW[b]
                pl.BlockSpec((1, 1, K), lambda b: (b, 0, 0)),    # diag(HW)[b]
                pl.BlockSpec((1, K, 1), lambda b: (b, 0, 0)),    # colmean(HW)[b]
                pl.BlockSpec((1, 5, K), lambda b: (b, 0, 0)),    # x0[b]
                # one packed weight slab, resident across all grid steps
                pl.BlockSpec((num_itr, N_ROWS, LANES), lambda b: (0, 0, 0)),
            ],
            out_specs=pl.BlockSpec((1, 9, K), lambda b: (b, 0, 0)),
        ),
        compiler_params=pltpu.CompilerParams(
            dimension_semantics=("parallel",),      # batch elements are independent
            vmem_limit_bytes=32 * 1024 * 1024),     # explicit, safe on v5e/v6e/v7x
    )(HW, diag_hw, cmean_hw, x5, w_slab)

    x = out[:, 0:5, :].reshape(B, 5 * K)
    f_list = [out[:, 5, :], out[:, 6, :], out[:, 7, :], out[:, 8, :]]
    return x, f_list


def init_layer_params(key, K):
    ks = jax.random.split(key, 8)

    def w(k, shape):
        return (0.1 * jax.random.normal(k, shape)).astype(F32)

    w00 = w(ks[0], (5, HID))
    w01 = w(ks[1], (5, HID))
    w10 = w(ks[2], (HID, 2))
    w11 = w(ks[3], (HID, 2))
    v00 = w(ks[4], (K + 5, HID))
    v01 = w(ks[5], (K + 5, HID))
    v10 = w(ks[6], (HID, 5))
    v11 = w(ks[7], (HID, 5))
    return (w00, w01, w10, w11, v00, v01, v10, v11)


if __name__ == "__main__":
    # args: K=4, batchsize=2, max_itr=2, Pmax=1.0, Vartheta=0.5
    K = 4
    B = 2
    max_itr = 2
    M = 5 * K
    alpha_k = 1.0 / K
    vartheta = 0.5
    Pmax = 1.0
    nu3_val = 0.1
    tilde_gamma_val = 2.0

    key = jax.random.PRNGKey(0)
    k_hw, k_x, k_p = jax.random.split(key, 3)
    HW = jnp.abs(jax.random.normal(k_hw, (B, K, K), dtype=F32))
    x0 = 0.1 * jnp.abs(jax.random.normal(k_x, (B, M), dtype=F32))

    layer_keys = jax.random.split(k_p, max_itr)
    params = [init_layer_params(layer_keys[i], K) for i in range(max_itr)]

    x_out, f_list = power_control_net(
        HW, x0, nu3_val, tilde_gamma_val,
        None, None, None, None, None, None, max_itr,
        params=params, K=K, alpha_k=alpha_k, vartheta=vartheta, Pmax=Pmax)

    x_out = jax.block_until_ready(x_out)
    for f in f_list:
        jax.block_until_ready(f)

    assert x_out.shape == (B, M)
    assert len(f_list) == 4 and all(f.shape == (B, K) for f in f_list)
    assert bool(jnp.all(jnp.isfinite(x_out)))
    assert all(bool(jnp.all(jnp.isfinite(f))) for f in f_list)
    print("KERNEL_OK")
</pallas_src>

<mosaic_0001>
module attributes {stable_mosaic.version = 11 : i64} {
  func.func @fused_pocs_kernel(%arg0: i32, %arg1: memref<1x4x4xf32, #tpu.memory_space<vmem>>, %arg2: memref<1x1x4xf32, #tpu.memory_space<vmem>>, %arg3: memref<1x4x1xf32, #tpu.memory_space<vmem>>, %arg4: memref<1x5x4xf32, #tpu.memory_space<vmem>>, %arg5: memref<2x88x128xf32, #tpu.memory_space<vmem>>, %arg6: memref<1x9x4xf32, #tpu.memory_space<vmem>>) attributes {dimension_semantics = [#tpu.dimension_semantics<parallel>], iteration_bounds = array<i64: 2>, scalar_prefetch = 0 : i64, scratch_operands = 0 : i64, tpu.core_type = #tpu.core_type<tc>, window_params = [{transform_indices = @transform_0, window_bounds = array<i64: 1, 4, 4>}, {transform_indices = @transform_1, window_bounds = array<i64: 1, 1, 4>}, {transform_indices = @transform_2, window_bounds = array<i64: 1, 4, 1>}, {transform_indices = @transform_3, window_bounds = array<i64: 1, 5, 4>}, {pipeline_mode = #tpu.pipeline_mode<synchronous>, transform_indices = @transform_4, window_bounds = array<i64: 2, 88, 128>}, {transform_indices = @transform_5, window_bounds = array<i64: 1, 9, 4>}]} {
    %c0 = arith.constant 0 : index
    %c0_0 = arith.constant 0 : index
    %c0_1 = arith.constant 0 : index
    %0 = vector.load %arg1[%c0, %c0_0, %c0_1] : memref<1x4x4xf32, #tpu.memory_space<vmem>>, vector<1x4x4xf32>
    %1 = vector.shape_cast %0 : vector<1x4x4xf32> to vector<4x4xf32>
    %c0_2 = arith.constant 0 : index
    %c0_3 = arith.constant 0 : index
    %c0_4 = arith.constant 0 : index
    %2 = vector.load %arg2[%c0_2, %c0_3, %c0_4] : memref<1x1x4xf32, #tpu.memory_space<vmem>>, vector<1x1x4xf32>
    %3 = vector.shape_cast %2 : vector<1x1x4xf32> to vector<1x4xf32>
    %c0_5 = arith.constant 0 : index
    %c0_6 = arith.constant 0 : index
    %c0_7 = arith.constant 0 : index
    %4 = vector.load %arg3[%c0_5, %c0_6, %c0_7] : memref<1x4x1xf32, #tpu.memory_space<vmem>>, vector<1x4x1xf32>
    %5 = vector.shape_cast %4 : vector<1x4x1xf32> to vector<4x1xf32>
    %c0_8 = arith.constant 0 : index
    %c0_9 = arith.constant 0 : index
    %c0_10 = arith.constant 0 : index
    %6 = vector.load %arg4[%c0_8, %c0_9, %c0_10] : memref<1x5x4xf32, #tpu.memory_space<vmem>>, vector<1x5x4xf32>
    %7 = vector.shape_cast %6 : vector<1x5x4xf32> to vector<5x4xf32>
    %8 = tpu.iota {dimensions = array<i32: 0>} : vector<5x4xi32>
    %c1_i32 = arith.constant 1 : i32
    %9 = vector.broadcast %c1_i32 : i32 to vector<5x4xi32>
    %10 = arith.cmpi eq, %8, %9 : vector<5x4xi32>
    %cst = arith.constant 1.000000e-01 : f32
    %cst_11 = arith.constant 0.000000e+00 : f32
    %11 = vector.broadcast %cst : f32 to vector<5x4xf32>
    %12 = vector.broadcast %cst_11 : f32 to vector<5x4xf32>
    %13 = arith.select %10, %11, %12 : vector<5x4xi1>, vector<5x4xf32>
    %c2_i32 = arith.constant 2 : i32
    %14 = vector.broadcast %c2_i32 : i32 to vector<5x4xi32>
    %15 = arith.cmpi eq, %8, %14 : vector<5x4xi32>
    %cst_12 = arith.constant 2.000000e+00 : f32
    %cst_13 = arith.constant 1.000000e+09 : f32
    %16 = vector.broadcast %cst_12 : f32 to vector<5x4xf32>
    %17 = vector.broadcast %cst_13 : f32 to vector<5x4xf32>
    %18 = arith.select %15, %16, %17 : vector<5x4xi1>, vector<5x4xf32>
    %c3_i32 = arith.constant 3 : i32
    %19 = vector.broadcast %c3_i32 : i32 to vector<5x4xi32>
    %20 = arith.cmpi eq, %8, %19 : vector<5x4xi32>
    %cst_14 = arith.constant 0.17355372 : f32
    %cst_15 = arith.constant 0.000000e+00 : f32
    %21 = vector.broadcast %cst_14 : f32 to vector<5x4xf32>
    %22 = vector.broadcast %cst_15 : f32 to vector<5x4xf32>
    %23 = arith.select %20, %21, %22 : vector<5x4xi1>, vector<5x4xf32>
    %c3_i32_16 = arith.constant 3 : i32
    %24 = vector.broadcast %c3_i32_16 : i32 to vector<5x4xi32>
    %25 = arith.cmpi eq, %8, %24 : vector<5x4xi32>
    %cst_17 = arith.constant 0.888888895 : f32
    %cst_18 = arith.constant 1.000000e+09 : f32
    %26 = vector.broadcast %cst_17 : f32 to vector<5x4xf32>
    %27 = vector.broadcast %cst_18 : f32 to vector<5x4xf32>
    %28 = arith.select %25, %26, %27 : vector<5x4xi1>, vector<5x4xf32>
    %c0_i32 = arith.constant 0 : i32
    %29 = vector.broadcast %c0_i32 : i32 to vector<5x4xi32>
    %30 = arith.cmpi eq, %8, %29 : vector<5x4xi32>
    %c1_i32_19 = arith.constant 1 : i32
    %31 = vector.broadcast %c1_i32_19 : i32 to vector<5x4xi32>
    %32 = arith.cmpi eq, %8, %31 : vector<5x4xi32>
    %c4_i32 = arith.constant 4 : i32
    %33 = vector.broadcast %c4_i32 : i32 to vector<5x4xi32>
    %34 = arith.cmpi eq, %8, %33 : vector<5x4xi32>
    %c0_20 = arith.constant 0 : index
    %c0_21 = arith.constant 0 : index
    %c0_22 = arith.constant 0 : index
    %35 = vector.load %arg5[%c0_20, %c0_21, %c0_22] : memref<2x88x128xf32, #tpu.memory_space<vmem>>, vector<1x5x128xf32>
    %36 = vector.shape_cast %35 : vector<1x5x128xf32> to vector<5x128xf32>
    %c0_23 = arith.constant 0 : index
    %c8 = arith.constant 8 : index
    %c0_24 = arith.constant 0 : index
    %37 = vector.load %arg5[%c0_23, %c8, %c0_24] : memref<2x88x128xf32, #tpu.memory_space<vmem>>, vector<1x32x128xf32>
    %38 = vector.shape_cast %37 : vector<1x32x128xf32> to vector<32x128xf32>
    %c0_25 = arith.constant 0 : index
    %c40 = arith.constant 40 : index
    %c0_26 = arith.constant 0 : index
    %39 = vector.load %arg5[%c0_25, %c40, %c0_26] : memref<2x88x128xf32, #tpu.memory_space<vmem>>, vector<1x4x128xf32>
    %40 = vector.shape_cast %39 : vector<1x4x128xf32> to vector<4x128xf32>
    %c0_27 = arith.constant 0 : index
    %c48 = arith.constant 48 : index
    %c0_28 = arith.constant 0 : index
    %41 = vector.load %arg5[%c0_27, %c48, %c0_28] : memref<2x88x128xf32, #tpu.memory_space<vmem>>, vector<1x5x128xf32>
    %42 = vector.shape_cast %41 : vector<1x5x128xf32> to vector<5x128xf32>
    %c0_29 = arith.constant 0 : index
    %c56 = arith.constant 56 : index
    %c0_30 = arith.constant 0 : index
    %43 = vector.load %arg5[%c0_29, %c56, %c0_30] : memref<2x88x128xf32, #tpu.memory_space<vmem>>, vector<1x32x10xf32>
    %44 = vector.shape_cast %43 : vector<1x32x10xf32> to vector<32x10xf32>
    %cst_31 = arith.constant dense<0.000000e+00> : vector<4x128xf32>
    %45 = tpu.matmul %7, %36, %cst_31 {dimension_numbers = #tpu.dot_dimension_numbers<[0], [0], [1], [1], [0, 1, 1, 1], [], []>} : vector<5x4xf32>, vector<5x128xf32>, vector<4x128xf32> -> vector<4x128xf32>
    %46 = vector.extract_strided_slice %45 {offsets = [0, 0], sizes = [4, 32], strides = [1, 1]} : vector<4x128xf32> to vector<4x32xf32>
    %47 = vector.extract_strided_slice %45 {offsets = [0, 32], sizes = [4, 32], strides = [1, 1]} : vector<4x128xf32> to vector<4x32xf32>
    %cst_32 = arith.constant dense<0.000000e+00> : vector<4x32xf32>
    %48 = tpu.matmul %1, %47, %cst_32 {dimension_numbers = #tpu.dot_dimension_numbers<[1], [0], [0], [1], [0, 0, 1, 1], [], []>} : vector<4x4xf32>, vector<4x32xf32>, vector<4x32xf32> -> vector<4x32xf32>
    %49 = arith.addf %46, %48 : vector<4x32xf32>
    %cst_33 = arith.constant 0.000000e+00 : f32
    %50 = vector.broadcast %cst_33 : f32 to vector<4x32xf32>
    %51 = arith.maximumf %49, %50 : vector<4x32xf32>
    %cst_34 = arith.constant dense<0.000000e+00> : vector<4x128xf32>
    %52 = tpu.matmul %51, %38, %cst_34 {dimension_numbers = #tpu.dot_dimension_numbers<[1], [0], [0], [1], [0, 0, 1, 1], [], []>} : vector<4x32xf32>, vector<32x128xf32>, vector<4x128xf32> -> vector<4x128xf32>
    %53 = vector.extract_strided_slice %52 {offsets = [0, 0], sizes = [4, 2], strides = [1, 1]} : vector<4x128xf32> to vector<4x2xf32>
    %cst_35 = arith.constant dense<0.000000e+00> : vector<2xf32>
    %54 = vector.multi_reduction <add>, %53, %cst_35 [0] : vector<4x2xf32> to vector<2xf32>
    %55 = vector.shape_cast %54 : vector<2xf32> to vector<1x2xf32>
    %cst_36 = arith.constant 4.000000e+00 : f32
    %56 = vector.broadcast %cst_36 : f32 to vector<1x2xf32>
    %57 = arith.divf %55, %56 : vector<1x2xf32>
    %58 = vector.extract_strided_slice %52 {offsets = [0, 2], sizes = [4, 2], strides = [1, 1]} : vector<4x128xf32> to vector<4x2xf32>
    %59 = vector.broadcast %5 : vector<4x1xf32> to vector<4x2xf32>
    %60 = arith.mulf %59, %58 : vector<4x2xf32>
    %cst_37 = arith.constant dense<0.000000e+00> : vector<2xf32>
    %61 = vector.multi_reduction <add>, %60, %cst_37 [0] : vector<4x2xf32> to vector<2xf32>
    %62 = vector.shape_cast %61 : vector<2xf32> to vector<1x2xf32>
    %63 = arith.addf %57, %62 : vector<1x2xf32>
    %cst_38 = arith.constant 0.000000e+00 : f32
    %64 = vector.broadcast %cst_38 : f32 to vector<1x2xf32>
    %65 = arith.maximumf %63, %64 : vector<1x2xf32>
    %66 = vector.extract_strided_slice %65 {offsets = [0, 0], sizes = [1, 1], strides = [1, 1]} : vector<1x2xf32> to vector<1x1xf32>
    %67 = vector.extract_strided_slice %65 {offsets = [0, 1], sizes = [1, 1], strides = [1, 1]} : vector<1x2xf32> to vector<1x1xf32>
    %68 = vector.extract_strided_slice %7 {offsets = [1, 0], sizes = [1, 4], strides = [1, 1]} : vector<5x4xf32> to vector<1x4xf32>
    %cst_39 = arith.constant 1.000000e+00 : f32
    %69 = vector.broadcast %cst_39 : f32 to vector<1x4xf32>
    %70 = arith.addf %69, %68 : vector<1x4xf32>
    %cst_40 = arith.constant 2.500000e-01 : f32
    %71 = vector.broadcast %cst_40 : f32 to vector<1x4xf32>
    %72 = arith.divf %71, %70 : vector<1x4xf32>
    %73 = vector.broadcast %66 : vector<1x1xf32> to vector<1x4xf32>
    %74 = arith.mulf %73, %72 : vector<1x4xf32>
    %cst_41 = arith.constant 1.250000e-01 : f32
    %75 = vector.broadcast %cst_41 : f32 to vector<1x1xf32>
    %76 = arith.mulf %67, %75 : vector<1x1xf32>
    %cst_42 = arith.constant 0.000000e+00 : f32
    %77 = vector.broadcast %cst_42 : f32 to vector<1x4xf32>
    %78 = arith.subf %77, %74 : vector<1x4xf32>
    %cst_43 = arith.constant 0.000000e+00 : f32
    %79 = vector.shape_cast %78 : vector<1x4xf32> to vector<1x4xf32>
    %80 = vector.broadcast %79 : vector<1x4xf32> to vector<5x4xf32>
    %81 = vector.broadcast %cst_43 : f32 to vector<5x4xf32>
    %82 = arith.select %32, %80, %81 : vector<5x4xi1>, vector<5x4xf32>
    %83 = arith.addf %7, %82 : vector<5x4xf32>
    %cst_44 = arith.constant 0.000000e+00 : f32
    %84 = vector.shape_cast %76 : vector<1x1xf32> to vector<1x1xf32>
    %85 = vector.broadcast %84 : vector<1x1xf32> to vector<5x4xf32>
    %86 = vector.broadcast %cst_44 : f32 to vector<5x4xf32>
    %87 = arith.select %34, %85, %86 : vector<5x4xi1>, vector<5x4xf32>
    %88 = arith.addf %83, %87 : vector<5x4xf32>
    %cst_45 = arith.constant dense<0.000000e+00> : vector<4x128xf32>
    %89 = tpu.matmul %1, %40, %cst_45 {dimension_numbers = #tpu.dot_dimension_numbers<[1], [0], [0], [1], [0, 0, 1, 1], [], []>} : vector<4x4xf32>, vector<4x128xf32>, vector<4x128xf32> -> vector<4x128xf32>
    %cst_46 = arith.constant dense<0.000000e+00> : vector<4x128xf32>
    %90 = tpu.matmul %88, %42, %cst_46 {dimension_numbers = #tpu.dot_dimension_numbers<[0], [0], [1], [1], [0, 1, 1, 1], [], []>} : vector<5x4xf32>, vector<5x128xf32>, vector<4x128xf32> -> vector<4x128xf32>
    %91 = arith.addf %89, %90 : vector<4x128xf32>
    %92 = vector.extract_strided_slice %91 {offsets = [0, 0], sizes = [4, 32], strides = [1, 1]} : vector<4x128xf32> to vector<4x32xf32>
    %93 = vector.extract_strided_slice %91 {offsets = [0, 32], sizes = [4, 32], strides = [1, 1]} : vector<4x128xf32> to vector<4x32xf32>
    %cst_47 = arith.constant dense<0.000000e+00> : vector<4x32xf32>
    %94 = tpu.matmul %1, %93, %cst_47 {dimension_numbers = #tpu.dot_dimension_numbers<[1], [0], [0], [1], [0, 0, 1, 1], [], []>} : vector<4x4xf32>, vector<4x32xf32>, vector<4x32xf32> -> vector<4x32xf32>
    %95 = arith.addf %92, %94 : vector<4x32xf32>
    %cst_48 = arith.constant 0.000000e+00 : f32
    %96 = vector.broadcast %cst_48 : f32 to vector<4x32xf32>
    %97 = arith.maximumf %95, %96 : vector<4x32xf32>
    %cst_49 = arith.constant dense<0.000000e+00> : vector<10x4xf32>
    %98 = tpu.matmul %44, %97, %cst_49 {dimension_numbers = #tpu.dot_dimension_numbers<[0], [1], [1], [0], [0, 1, 1, 0], [], []>} : vector<32x10xf32>, vector<4x32xf32>, vector<10x4xf32> -> vector<10x4xf32>
    %99 = vector.extract_strided_slice %98 {offsets = [0, 0], sizes = [5, 4], strides = [1, 1]} : vector<10x4xf32> to vector<5x4xf32>
    %100 = vector.extract_strided_slice %98 {offsets = [5, 0], sizes = [5, 4], strides = [1, 1]} : vector<10x4xf32> to vector<5x4xf32>
    %cst_50 = arith.constant dense<0.000000e+00> : vector<5x4xf32>
    %101 = tpu.matmul %100, %1, %cst_50 {dimension_numbers = #tpu.dot_dimension_numbers<[1], [1], [0], [0], [0, 0, 1, 0], [], []>} : vector<5x4xf32>, vector<4x4xf32>, vector<5x4xf32> -> vector<5x4xf32>
    %102 = arith.addf %99, %101 : vector<5x4xf32>
    %103 = arith.addf %88, %102 : vector<5x4xf32>
    %104 = vector.extract_strided_slice %103 {offsets = [0, 0], sizes = [1, 4], strides = [1, 1]} : vector<5x4xf32> to vector<1x4xf32>
    %cst_51 = arith.constant dense<0.000000e+00> : vector<1xf32>
    %105 = vector.multi_reduction <add>, %104, %cst_51 [1] : vector<1x4xf32> to vector<1xf32>
    %106 = vector.shape_cast %105 : vector<1xf32> to vector<1x1xf32>
    %cst_52 = arith.constant 1.000000e+00 : f32
    %107 = vector.broadcast %cst_52 : f32 to vector<1x1xf32>
    %108 = arith.subf %106, %107 : vector<1x1xf32>
    %cst_53 = arith.constant 0.000000e+00 : f32
    %109 = vector.broadcast %cst_53 : f32 to vector<1x1xf32>
    %110 = arith.cmpf ogt, %108, %109 : vector<1x1xf32>
    %cst_54 = arith.constant 2.500000e-01 : f32
    %111 = vector.broadcast %cst_54 : f32 to vector<1x1xf32>
    %112 = arith.mulf %108, %111 : vector<1x1xf32>
    %cst_55 = arith.constant 0.000000e+00 : f32
    %113 = vector.broadcast %cst_55 : f32 to vector<1x1xf32>
    %114 = arith.select %110, %112, %113 : vector<1x1xi1>, vector<1x1xf32>
    %cst_56 = arith.constant 0.000000e+00 : f32
    %115 = vector.shape_cast %114 : vector<1x1xf32> to vector<1x1xf32>
    %116 = vector.broadcast %115 : vector<1x1xf32> to vector<5x4xf32>
    %117 = vector.broadcast %cst_56 : f32 to vector<5x4xf32>
    %118 = arith.select %30, %116, %117 : vector<5x4xi1>, vector<5x4xf32>
    %119 = arith.subf %103, %118 : vector<5x4xf32>
    %120 = arith.maximumf %119, %13 : vector<5x4xf32>
    %121 = arith.minimumf %120, %18 : vector<5x4xf32>
    %122 = arith.maximumf %121, %23 : vector<5x4xf32>
    %123 = arith.minimumf %122, %28 : vector<5x4xf32>
    %c1 = arith.constant 1 : index
    %c0_57 = arith.constant 0 : index
    %c0_58 = arith.constant 0 : index
    %124 = vector.load %arg5[%c1, %c0_57, %c0_58] : memref<2x88x128xf32, #tpu.memory_space<vmem>>, vector<1x5x128xf32>
    %125 = vector.shape_cast %124 : vector<1x5x128xf32> to vector<5x128xf32>
    %c1_59 = arith.constant 1 : index
    %c8_60 = arith.constant 8 : index
    %c0_61 = arith.constant 0 : index
    %126 = vector.load %arg5[%c1_59, %c8_60, %c0_61] : memref<2x88x128xf32, #tpu.memory_space<vmem>>, vector<1x32x128xf32>
    %127 = vector.shape_cast %126 : vector<1x32x128xf32> to vector<32x128xf32>
    %c1_62 = arith.constant 1 : index
    %c40_63 = arith.constant 40 : index
    %c0_64 = arith.constant 0 : index
    %128 = vector.load %arg5[%c1_62, %c40_63, %c0_64] : memref<2x88x128xf32, #tpu.memory_space<vmem>>, vector<1x4x128xf32>
    %129 = vector.shape_cast %128 : vector<1x4x128xf32> to vector<4x128xf32>
    %c1_65 = arith.constant 1 : index
    %c48_66 = arith.constant 48 : index
    %c0_67 = arith.constant 0 : index
    %130 = vector.load %arg5[%c1_65, %c48_66, %c0_67] : memref<2x88x128xf32, #tpu.memory_space<vmem>>, vector<1x5x128xf32>
    %131 = vector.shape_cast %130 : vector<1x5x128xf32> to vector<5x128xf32>
    %c1_68 = arith.constant 1 : index
    %c56_69 = arith.constant 56 : index
    %c0_70 = arith.constant 0 : index
    %132 = vector.load %arg5[%c1_68, %c56_69, %c0_70] : memref<2x88x128xf32, #tpu.memory_space<vmem>>, vector<1x32x10xf32>
    %133 = vector.shape_cast %132 : vector<1x32x10xf32> to vector<32x10xf32>
    %cst_71 = arith.constant dense<0.000000e+00> : vector<4x128xf32>
    %134 = tpu.matmul %123, %125, %cst_71 {dimension_numbers = #tpu.dot_dimension_numbers<[0], [0], [1], [1], [0, 1, 1, 1], [], []>} : vector<5x4xf32>, vector<5x128xf32>, vector<4x128xf32> -> vector<4x128xf32>
    %135 = vector.extract_strided_slice %134 {offsets = [0, 0], sizes = [4, 32], strides = [1, 1]} : vector<4x128xf32> to vector<4x32xf32>
    %136 = vector.extract_strided_slice %134 {offsets = [0, 32], sizes = [4, 32], strides = [1, 1]} : vector<4x128xf32> to vector<4x32xf32>
    %cst_72 = arith.constant dense<0.000000e+00> : vector<4x32xf32>
    %137 = tpu.matmul %1, %136, %cst_72 {dimension_numbers = #tpu.dot_dimension_numbers<[1], [0], [0], [1], [0, 0, 1, 1], [], []>} : vector<4x4xf32>, vector<4x32xf32>, vector<4x32xf32> -> vector<4x32xf32>
    %138 = arith.addf %135, %137 : vector<4x32xf32>
    %cst_73 = arith.constant 0.000000e+00 : f32
    %139 = vector.broadcast %cst_73 : f32 to vector<4x32xf32>
    %140 = arith.maximumf %138, %139 : vector<4x32xf32>
    %cst_74 = arith.constant dense<0.000000e+00> : vector<4x128xf32>
    %141 = tpu.matmul %140, %127, %cst_74 {dimension_numbers = #tpu.dot_dimension_numbers<[1], [0], [0], [1], [0, 0, 1, 1], [], []>} : vector<4x32xf32>, vector<32x128xf32>, vector<4x128xf32> -> vector<4x128xf32>
    %142 = vector.extract_strided_slice %141 {offsets = [0, 0], sizes = [4, 2], strides = [1, 1]} : vector<4x128xf32> to vector<4x2xf32>
    %cst_75 = arith.constant dense<0.000000e+00> : vector<2xf32>
    %143 = vector.multi_reduction <add>, %142, %cst_75 [0] : vector<4x2xf32> to vector<2xf32>
    %144 = vector.shape_cast %143 : vector<2xf32> to vector<1x2xf32>
    %cst_76 = arith.constant 4.000000e+00 : f32
    %145 = vector.broadcast %cst_76 : f32 to vector<1x2xf32>
    %146 = arith.divf %144, %145 : vector<1x2xf32>
    %147 = vector.extract_strided_slice %141 {offsets = [0, 2], sizes = [4, 2], strides = [1, 1]} : vector<4x128xf32> to vector<4x2xf32>
    %148 = vector.broadcast %5 : vector<4x1xf32> to vector<4x2xf32>
    %149 = arith.mulf %148, %147 : vector<4x2xf32>
    %cst_77 = arith.constant dense<0.000000e+00> : vector<2xf32>
    %150 = vector.multi_reduction <add>, %149, %cst_77 [0] : vector<4x2xf32> to vector<2xf32>
    %151 = vector.shape_cast %150 : vector<2xf32> to vector<1x2xf32>
    %152 = arith.addf %146, %151 : vector<1x2xf32>
    %cst_78 = arith.constant 0.000000e+00 : f32
    %153 = vector.broadcast %cst_78 : f32 to vector<1x2xf32>
    %154 = arith.maximumf %152, %153 : vector<1x2xf32>
    %155 = vector.extract_strided_slice %154 {offsets = [0, 0], sizes = [1, 1], strides = [1, 1]} : vector<1x2xf32> to vector<1x1xf32>
    %156 = vector.extract_strided_slice %154 {offsets = [0, 1], sizes = [1, 1], strides = [1, 1]} : vector<1x2xf32> to vector<1x1xf32>
    %157 = vector.extract_strided_slice %123 {offsets = [1, 0], sizes = [1, 4], strides = [1, 1]} : vector<5x4xf32> to vector<1x4xf32>
    %cst_79 = arith.constant 1.000000e+00 : f32
    %158 = vector.broadcast %cst_79 : f32 to vector<1x4xf32>
    %159 = arith.addf %158, %157 : vector<1x4xf32>
    %cst_80 = arith.constant 2.500000e-01 : f32
    %160 = vector.broadcast %cst_80 : f32 to vector<1x4xf32>
    %161 = arith.divf %160, %159 : vector<1x4xf32>
    %162 = vector.broadcast %155 : vector<1x1xf32> to vector<1x4xf32>
    %163 = arith.mulf %162, %161 : vector<1x4xf32>
    %cst_81 = arith.constant 1.250000e-01 : f32
    %164 = vector.broadcast %cst_81 : f32 to vector<1x1xf32>
    %165 = arith.mulf %156, %164 : vector<1x1xf32>
    %cst_82 = arith.constant 0.000000e+00 : f32
    %166 = vector.broadcast %cst_82 : f32 to vector<1x4xf32>
    %167 = arith.subf %166, %163 : vector<1x4xf32>
    %cst_83 = arith.constant 0.000000e+00 : f32
    %168 = vector.shape_cast %167 : vector<1x4xf32> to vector<1x4xf32>
    %169 = vector.broadcast %168 : vector<1x4xf32> to vector<5x4xf32>
    %170 = vector.broadcast %cst_83 : f32 to vector<5x4xf32>
    %171 = arith.select %32, %169, %170 : vector<5x4xi1>, vector<5x4xf32>
    %172 = arith.addf %123, %171 : vector<5x4xf32>
    %cst_84 = arith.constant 0.000000e+00 : f32
    %173 = vector.shape_cast %165 : vector<1x1xf32> to vector<1x1xf32>
    %174 = vector.broadcast %173 : vector<1x1xf32> to vector<5x4xf32>
    %175 = vector.broadcast %cst_84 : f32 to vector<5x4xf32>
    %176 = arith.select %34, %174, %175 : vector<5x4xi1>, vector<5x4xf32>
    %177 = arith.addf %172, %176 : vector<5x4xf32>
    %cst_85 = arith.constant dense<0.000000e+00> : vector<4x128xf32>
    %178 = tpu.matmul %1, %129, %cst_85 {dimension_numbers = #tpu.dot_dimension_numbers<[1], [0], [0], [1], [0, 0, 1, 1], [], []>} : vector<4x4xf32>, vector<4x128xf32>, vector<4x128xf32> -> vector<4x128xf32>
    %cst_86 = arith.constant dense<0.000000e+00> : vector<4x128xf32>
    %179 = tpu.matmul %177, %131, %cst_86 {dimension_numbers = #tpu.dot_dimension_numbers<[0], [0], [1], [1], [0, 1, 1, 1], [], []>} : vector<5x4xf32>, vector<5x128xf32>, vector<4x128xf32> -> vector<4x128xf32>
    %180 = arith.addf %178, %179 : vector<4x128xf32>
    %181 = vector.extract_strided_slice %180 {offsets = [0, 0], sizes = [4, 32], strides = [1, 1]} : vector<4x128xf32> to vector<4x32xf32>
    %182 = vector.extract_strided_slice %180 {offsets = [0, 32], sizes = [4, 32], strides = [1, 1]} : vector<4x128xf32> to vector<4x32xf32>
    %cst_87 = arith.constant dense<0.000000e+00> : vector<4x32xf32>
    %183 = tpu.matmul %1, %182, %cst_87 {dimension_numbers = #tpu.dot_dimension_numbers<[1], [0], [0], [1], [0, 0, 1, 1], [], []>} : vector<4x4xf32>, vector<4x32xf32>, vector<4x32xf32> -> vector<4x32xf32>
    %184 = arith.addf %181, %183 : vector<4x32xf32>
    %cst_88 = arith.constant 0.000000e+00 : f32
    %185 = vector.broadcast %cst_88 : f32 to vector<4x32xf32>
    %186 = arith.maximumf %184, %185 : vector<4x32xf32>
    %cst_89 = arith.constant dense<0.000000e+00> : vector<10x4xf32>
    %187 = tpu.matmul %133, %186, %cst_89 {dimension_numbers = #tpu.dot_dimension_numbers<[0], [1], [1], [0], [0, 1, 1, 0], [], []>} : vector<32x10xf32>, vector<4x32xf32>, vector<10x4xf32> -> vector<10x4xf32>
    %188 = vector.extract_strided_slice %187 {offsets = [0, 0], sizes = [5, 4], strides = [1, 1]} : vector<10x4xf32> to vector<5x4xf32>
    %189 = vector.extract_strided_slice %187 {offsets = [5, 0], sizes = [5, 4], strides = [1, 1]} : vector<10x4xf32> to vector<5x4xf32>
    %cst_90 = arith.constant dense<0.000000e+00> : vector<5x4xf32>
    %190 = tpu.matmul %189, %1, %cst_90 {dimension_numbers = #tpu.dot_dimension_numbers<[1], [1], [0], [0], [0, 0, 1, 0], [], []>} : vector<5x4xf32>, vector<4x4xf32>, vector<5x4xf32> -> vector<5x4xf32>
    %191 = arith.addf %188, %190 : vector<5x4xf32>
    %192 = arith.addf %177, %191 : vector<5x4xf32>
    %193 = vector.extract_strided_slice %192 {offsets = [0, 0], sizes = [1, 4], strides = [1, 1]} : vector<5x4xf32> to vector<1x4xf32>
    %cst_91 = arith.constant dense<0.000000e+00> : vector<1xf32>
    %194 = vector.multi_reduction <add>, %193, %cst_91 [1] : vector<1x4xf32> to vector<1xf32>
    %195 = vector.shape_cast %194 : vector<1xf32> to vector<1x1xf32>
    %cst_92 = arith.constant 1.000000e+00 : f32
    %196 = vector.broadcast %cst_92 : f32 to vector<1x1xf32>
    %197 = arith.subf %195, %196 : vector<1x1xf32>
    %cst_93 = arith.constant 0.000000e+00 : f32
    %198 = vector.broadcast %cst_93 : f32 to vector<1x1xf32>
    %199 = arith.cmpf ogt, %197, %198 : vector<1x1xf32>
    %cst_94 = arith.constant 2.500000e-01 : f32
    %200 = vector.broadcast %cst_94 : f32 to vector<1x1xf32>
    %201 = arith.mulf %197, %200 : vector<1x1xf32>
    %cst_95 = arith.constant 0.000000e+00 : f32
    %202 = vector.broadcast %cst_95 : f32 to vector<1x1xf32>
    %203 = arith.select %199, %201, %202 : vector<1x1xi1>, vector<1x1xf32>
    %cst_96 = arith.constant 0.000000e+00 : f32
    %204 = vector.shape_cast %203 : vector<1x1xf32> to vector<1x1xf32>
    %205 = vector.broadcast %204 : vector<1x1xf32> to vector<5x4xf32>
    %206 = vector.broadcast %cst_96 : f32 to vector<5x4xf32>
    %207 = arith.select %30, %205, %206 : vector<5x4xi1>, vector<5x4xf32>
    %208 = arith.subf %192, %207 : vector<5x4xf32>
    %209 = arith.maximumf %208, %13 : vector<5x4xf32>
    %210 = arith.minimumf %209, %18 : vector<5x4xf32>
    %211 = arith.maximumf %210, %23 : vector<5x4xf32>
    %212 = arith.minimumf %211, %28 : vector<5x4xf32>
    %cst_97 = arith.constant 0.000000e+00 : f32
    %213 = vector.broadcast %cst_97 : f32 to vector<5x4xf32>
    %214 = arith.maximumf %212, %213 : vector<5x4xf32>
    %215 = vector.extract_strided_slice %214 {offsets = [0, 0], sizes = [1, 4], strides = [1, 1]} : vector<5x4xf32> to vector<1x4xf32>
    %216 = vector.extract_strided_slice %214 {offsets = [1, 0], sizes = [1, 4], strides = [1, 1]} : vector<5x4xf32> to vector<1x4xf32>
    %217 = vector.extract_strided_slice %214 {offsets = [2, 0], sizes = [1, 4], strides = [1, 1]} : vector<5x4xf32> to vector<1x4xf32>
    %218 = vector.extract_strided_slice %214 {offsets = [3, 0], sizes = [1, 4], strides = [1, 1]} : vector<5x4xf32> to vector<1x4xf32>
    %cst_98 = arith.constant 1.000000e+00 : f32
    %219 = vector.broadcast %cst_98 : f32 to vector<1x4xf32>
    %220 = arith.addf %219, %217 : vector<1x4xf32>
    %221 = arith.mulf %220, %220 : vector<1x4xf32>
    %cst_99 = arith.constant 1.000000e+00 : f32
    %222 = vector.broadcast %cst_99 : f32 to vector<1x4xf32>
    %223 = arith.divf %222, %221 : vector<1x4xf32>
    %cst_100 = arith.constant 1.000000e+00 : f32
    %224 = vector.broadcast %cst_100 : f32 to vector<1x4xf32>
    %225 = arith.subf %224, %223 : vector<1x4xf32>
    %226 = arith.subf %225, %218 : vector<1x4xf32>
    %227 = math.sqrt %218 : vector<1x4xf32>
    %228 = vector.extract_strided_slice %214 {offsets = [4, 0], sizes = [1, 4], strides = [1, 1]} : vector<5x4xf32> to vector<1x4xf32>
    %229 = arith.subf %227, %228 : vector<1x4xf32>
    %230 = arith.mulf %215, %3 : vector<1x4xf32>
    %cst_101 = arith.constant dense<0.000000e+00> : vector<1x4xf32>
    %231 = tpu.matmul %215, %1, %cst_101 {dimension_numbers = #tpu.dot_dimension_numbers<[1], [0], [0], [1], [0, 0, 1, 1], [], []>} : vector<1x4xf32>, vector<4x4xf32>, vector<1x4xf32> -> vector<1x4xf32>
    %232 = arith.subf %231, %230 : vector<1x4xf32>
    %cst_102 = arith.constant 1.000000e+00 : f32
    %233 = vector.broadcast %cst_102 : f32 to vector<1x4xf32>
    %234 = arith.addf %232, %233 : vector<1x4xf32>
    %235 = arith.mulf %234, %217 : vector<1x4xf32>
    %236 = arith.subf %230, %235 : vector<1x4xf32>
    %237 = arith.mulf %216, %234 : vector<1x4xf32>
    %238 = arith.subf %237, %230 : vector<1x4xf32>
    %239 = tpu.concatenate %214, %226, %229, %236, %238 in 0 : vector<5x4xf32>, vector<1x4xf32>, vector<1x4xf32>, vector<1x4xf32>, vector<1x4xf32> -> vector<9x4xf32>
    %c0_103 = arith.constant 0 : index
    %c0_104 = arith.constant 0 : index
    %c0_105 = arith.constant 0 : index
    %240 = vector.load %arg6[%c0_103, %c0_104, %c0_105] : memref<1x9x4xf32, #tpu.memory_space<vmem>>, vector<1x9x4xf32>
    %241 = vector.shape_cast %240 : vector<1x9x4xf32> to vector<9x4xf32>
    %242 = vector.shape_cast %239 : vector<9x4xf32> to vector<1x9x4xf32>
    tpu.vector_store %arg6[%c0_103, %c0_104, %c0_105], %242 {strides = array<i32>} : memref<1x9x4xf32, #tpu.memory_space<vmem>>, vector<1x9x4xf32>,
    return
  }
  func.func @transform_0(%arg0: i32) -> (i32, i32, i32) {
    %c0_i32 = arith.constant 0 : i32
    %c0_i32_0 = arith.constant 0 : i32
    %c0_i32_1 = arith.constant 0 : i32
    return %arg0, %c0_i32, %c0_i32_0 : i32, i32, i32
  }
  func.func @transform_1(%arg0: i32) -> (i32, i32, i32) {
    %c0_i32 = arith.constant 0 : i32
    %c0_i32_0 = arith.constant 0 : i32
    %c0_i32_1 = arith.constant 0 : i32
    return %arg0, %c0_i32, %c0_i32_0 : i32, i32, i32
  }
  func.func @transform_2(%arg0: i32) -> (i32, i32, i32) {
    %c0_i32 = arith.constant 0 : i32
    %c0_i32_0 = arith.constant 0 : i32
    %c0_i32_1 = arith.constant 0 : i32
    return %arg0, %c0_i32, %c0_i32_0 : i32, i32, i32
  }
  func.func @transform_3(%arg0: i32) -> (i32, i32, i32) {
    %c0_i32 = arith.constant 0 : i32
    %c0_i32_0 = arith.constant 0 : i32
    %c0_i32_1 = arith.constant 0 : i32
    return %arg0, %c0_i32, %c0_i32_0 : i32, i32, i32
  }
  func.func @transform_4(%arg0: i32) -> (i32, i32, i32) {
    %c0_i32 = arith.constant 0 : i32
    %c0_i32_0 = arith.constant 0 : i32
    %c0_i32_1 = arith.constant 0 : i32
    %c0_i32_2 = arith.constant 0 : i32
    return %c0_i32, %c0_i32_0, %c0_i32_1 : i32, i32, i32
  }
  func.func @transform_5(%arg0: i32) -> (i32, i32, i32) {
    %c0_i32 = arith.constant 0 : i32
    %c0_i32_0 = arith.constant 0 : i32
    %c0_i32_1 = arith.constant 0 : i32
    return %arg0, %c0_i32, %c0_i32_0 : i32, i32, i32
  }
}

</mosaic_0001>

<bundles_post_ra>
// kernel: tpu_custom_call.1
= control target key start
LH: loop header
LB: loop body
LE: loop exit
PB: predicated region body
PF: predicated region fallthrough
CT: control target
= control target key end

     0   :  { %10 = vsyncpa [#allocation3], 0  ;;  %s1487_s18 = smov 0   ;;  %s1641_s0 = inlined_call_operand.vmem [shape: f32[2,4,4], index: 0, kind: input, shape index: {}]   ;;  %s1642_s1 = inlined_call_operand.vmem [shape: f32[2,1,4], index: 1, kind: input, shape index: {}]   ;;  %s1643_s2 = inlined_call_operand.vmem [shape: f32[2,4,1], index: 2, kind: input, shape index: {}]   ;;  %s1644_s3 = inlined_call_operand.vmem [shape: f32[2,5,4], index: 3, kind: input, shape index: {}]   ;;  %s1645_s4 = inlined_call_operand.hbm [shape: f32[2,88,128], index: 4, kind: input, shape index: {}]   ;;  %s1646_s5 = inlined_call_operand.vmem [shape: f32[2,9,4], index: 5, kind: output, shape index: {}]  }
   0x1 LB: > { %s183_s21 = sshll.u32 %s1645_s4, 4  ;;  %s1309_s22 = sadd.s32 4294967295, %s1445_s18   ;;  %s1445_s18 = sphi %s1487_s18, %s16_s18   ;;  %s184_s21 = int_to_ptr.hbm [resolvable:$true] %s183_s21 }
   0x2   : > { %p1311_p0 = scmp.ge.s32.totalorder %s1445_s18, 1  ;;  %p172_p1 = scmp.lt.s32.totalorder %s1445_s18, 3 }
   0x3   : > { %p1372_p2 = scmp.eq.s32.totalorder %s1309_s22, 0  ;;  %s1447_s23 = smov [#allocation2]  }
   0x4   : > { %p173_p3 = pnand %p1311_p0, %p172_p1  ;;  %s185_s24 = sshll.u32 %s1447_s23, 4  ;;  %s186_s24 = int_to_ptr.vmem [resolvable:$true] %s185_s24 }
   0x5   : > { %s1448_s25 = smov 128   ;;  %s1449_s26 = smov 8  }
   0x6   : > { %p1368_p4 = pneg %p173_p3  ;;  %228 = sbr.rel (%p173_p3) target bundleno = 3942 (0xf66), region = 40 }
   0x8   : > { %p1369_p5 = pnand %p1372_p2, %p1368_p4 }
   0xa   : > { %1371 = dma.hbm_to_vmem [thread:$0]  (!%p1369_p5), %s184_s21, 2816, %s186_s24, [#allocation3], %s1448_s25, %s1448_s25, %s1449_s26  }
   0xb   : > { %1440 = dma.done.wait (%p1372_p2), [#allocation3], 2816  }
   0xc   : > { %1442 = vsyncadd (%p1372_p2), [#allocation3], 4294964480  ;;  %p267_p6 = scmp.lt.s32.totalorder %s1309_s22, 1  ;;  %vm349_vm0 = vcmask 1044480   ;;  %v302_v1 = vld [vmem:[#allocation2] sm:$0x1f]  ;;  %v291_v61 = vlaneseq }
   0xd   : > { %1321 = vmatpush.msk.msra.mxu0 %vm349_vm0, %v302_v1  ;;  %vm345_vm1 = vcmask 39936   ;;  %s1450_s6 = smov 96   ;;  %v306_v4 = vld [vmem:[#allocation2 + $0x20] sm:$0xff]  ;;  %vm380_vm2 = vcmask 1043456   ;;  %vm376_vm3 = vcmask 31744   ;;  %v305_v7 = vld [vmem:[#allocation2 + $0x18] sm:$0xff] }
   0xe   : > { %s1648_s22 = smov (!%p267_p6, %s1309_s22), 1  ;;  %421 = vmatpush.msra.mxu2 %v306_v4  ;;  %v304_v8 = vld [vmem:[#allocation2 + $0x10] sm:$0xff]  ;;  %v303_v9 = vld [vmem:[#allocation2 + $0x8] sm:$0xff]  ;;  %v1451_v11 = vmov 0   ;;  %vm405_vm4 = vcmask 261120   ;;  %vm451_vm5 = vcmask 27664  }
   0xf   : > { %s1318_s27 = sshll.u32 %s1648_s22, 3  ;;  %s1316_s7 = sshll.u32 %s1648_s22, 2  ;;  %1392 = vset.pattern.permute.xlu1 %v1451_v11  ;;  %1393 = vset.pattern.permute.xlu2 %v1451_v11  ;;  %vm429_vm6 = vcmask 11264   ;;  %v1453_v25 = vmov 4.0   ;;  %v308_v55 = vld [vmem:[#allocation2 + $0x30] sm:$0x1f] }
  0x10   : > { %s281_s30 = scalar_lea.vmem %s1644_s3, %s1318_s27  ;;  %s270_s10 = scalar_lea.vmem %s1641_s0, %s1316_s7  ;;  %422 = vmatpush.msra.mxu2 %v305_v7  ;;  %1395 = vrcp.f32 %v1453_v25  ;;  %1326 = vmatpush.msk.msra.mxu3 %vm349_vm0, %v308_v55  ;;  %v1535_v63 = vshrl.u32 %v291_v61, 7  ;;  %vm677_vm14 = vcmask 1042432   ;;  %vm705_vm15 = vcmask 24576   ;;  %v724_v55 = vld [vmem:[#allocation2 + $0x70] sm:$0xff] }
  0x11   : > { %v1504_v0 = vld [vmem:[%s281_s30] sm:$0x1f]  ;;  %s277_s13 = scalar_lea.vmem %s1643_s2, %s1316_s7  ;;  %s1452_s14 = smov 126  }
  0x12   : > { %313 = vxpose.xlu0.b32.start.end [1/1] (short) (narrow) %v1504_v0, 8  ;;  %v1514_v5 = vld [vmem:[%s270_s10] sm:$0xf]  ;;  %423 = vmatpush.msra.mxu2 %v304_v8  ;;  %s1454_s15 = smov 127   ;;  %v465_v44 = vadd.f32 1.0, %v1504_v0  ;;  %vm293_vm12 = vcmp.eq.s32.totalorder %v1535_v63, 1  ;;  %s273_s21 = scalar_lea.vmem %s1642_s1, %s1648_s22 }
  0x13   : > { %v289_v10 = vld [vmem:[%s277_s13] sm:$0xf]  ;;  %vm301_vm13 = vcmp.eq.s32.totalorder %v1535_v63, 4  ;;  %v307_v8 = vld [vmem:[#allocation2 + $0x28] sm:$0xf]  ;;  %s1359_s23 = sshll.u32 %s1648_s22, 4 }
  0x14   : > { %424 = vmatpush.msra.mxu2 %v303_v9  ;;  %447 = vperm.xlu1 %1392, %v289_v10   ;;  %1397 = vrcp.f32 %v465_v44  ;;  %vm471_vm8 = vweird.f32 %v465_v44  ;;  %v477_v50 = vand.u32 2147483648, %v465_v44  ;;  %v475_v52 = vand.u32 2147483647, %v465_v44  ;;  %s286_s26 = scalar_lea.vmem %s1646_s5, %s1359_s23 }
  0x15   : > { %1328 = vmatpush.msk.msrb.mxu0 %vm380_vm2, %v307_v8 }
  0x16   : > { %v1396_v28 = vpop.eup %1395  ;;  %v478_v53 = vor.u32 1.1754944e-38, %v477_v50  ;;  %vm476_vm11 = vcmp.eq.f32.partialorder %v475_v52, 8.507059e+37 }
  0x17   : > { %v438_v30 = vmul.f32 4.0, %v1396_v28  ;;  %vm442_vm7 = vweird.f32 %v1396_v28 }
  0x19   : > { %v439_v32 = vsub.f32 1.0, %v438_v30 }
  0x1a   : > { %v1398_v46 = vpop.eup %1397 }
  0x1b   : > { %v440_v34 = vmul.f32 %v1396_v28, %v439_v32  ;;  %v467_v47 = vmul.f32 %v1398_v46, %v465_v44  ;;  %vm472_vm9 = vweird.f32 %v1398_v46  ;;  %v721_v32 = vld [vmem:[#allocation2 + $0x58] sm:$0x1f] }
  0x1c   : > { %vm473_vm10 = vmor %vm471_vm8, %vm472_vm9  ;;  %vm300_vm8 = vcmp.eq.s32.totalorder %v1535_v63, 0  ;;  %vm295_vm9 = vcmp.eq.s32.totalorder %v1535_v63, 2 }
  0x1d   : > { %v441_v36 = vadd.f32 %v1396_v28, %v440_v34  ;;  %v468_v48 = vsub.f32 1.0, %v467_v47 }
  0x1f   : > { %v1529_v38 = vsel %vm442_vm7, %v1396_v28, %v441_v36  ;;  %v469_v49 = vmul.f32 %v1398_v46, %v468_v48 }
  0x21   : > { %v470_v51 = vadd.f32 %v1398_v46, %v469_v49 }
  0x23   : > { %v474_v54 = vsel %vm473_vm10, %v1398_v46, %v470_v51  ;;  %vm297_vm10 = vcmp.eq.s32.totalorder %v1535_v63, 3 }
  0x24   : > { %v479_v56 = vsel %vm476_vm11, %v478_v53, %v474_v54  ;;  %v725_v53 = vld [vmem:[#allocation2 + $0x78] sm:$0xff] }
  0x25   : > { %v480_v57 = vmul.f32 0.25, %v479_v56  ;;  %832 = vmatpush.msrb.mxu2 %v725_v53  ;;  %v723_v56 = vld [vmem:[#allocation2 + $0x68] sm:$0xff]  ;;  %v730_v53 = vld [vmem:[#allocation2 + $0xa0] sm:$0xff] }
  0x27   : > { %v487_v58 = vrot.slane %v480_v57, 1  ;;  %833 = vmatpush.msrb.mxu2 %v724_v55  ;;  %v722_v57 = vld [vmem:[#allocation2 + $0x60] sm:$0xff] }
  0x29   : > { %834 = vmatpush.msrb.mxu2 %v723_v56 }
  0x2b   : > { %835 = vmatpush.msrb.mxu2 %v722_v57 }
  0x79   : > { %1394 = vset.pattern.permute.xlu0 %v1451_v11 }
  0x86   : > { %v1523_v15 = vpop.permute.xlu1 %447 }
  0xb6   : > { %v329_v2 = vpop.trf.xlu0 }
  0xb7   : > { %1322 = vmatmul.msk.f32.vlgmr.msra.gmra.mxu0 %vm345_vm1, %v329_v2 }
  0xb8   : > { %1338 = vmatpush.msk.msra.mxu0 %vm349_vm0, %v721_v32 }
  0xbf   : > { %1329 = vmatmul.msk.f32.vlgmr.msrb.gmra.mxu0 %vm376_vm3, %v1514_v5 }
 0x134   : > { %v370_v3 = vpop.f32.mrf.mxu0 }
 0x135   : > { %374 = vrot.lane.b32.xlu0 %v370_v3, %s1450_s6 }
 0x13c   : > { %v581_v10 = vpop.f32.mrf.mxu0 }
 0x1a7   : > { %v375_v6 = vpop.permute.xlu0 %374 }
 0x1a8   : > { %1323 = vmatpush.msk.msra.mxu1 %vm380_vm2, %v375_v6 }
 0x1a9   : > { %1324 = vmatmul.msk.f32.vlgmr.msra.gmra.mxu1 %vm376_vm3, %v1514_v5 }
 0x226   : > { %v400_v12 = vpop.f32.mrf.mxu1 }
 0x227   : > { %v403_v13 = vadd.f32 %v400_v12, %v370_v3 }
 0x229   : > { %v404_v14 = vmax.f32 %v403_v13, 0.0  ;;  %v310_v13 = vld [vmem:[#allocation2 + $0x40] sm:$0xff] }
 0x22b   : > { %1325 = vmatmul.msk.f32.vlgmr.msra.gmra.mxu2 %vm405_vm4, %v404_v14  ;;  %v311_v14 = vld [vmem:[#allocation2 + $0x48] sm:$0xff] }
 0x2ae   : > { %v426_v16 = vpop.f32.mrf.mxu2 }
 0x2af   : > { %v450_v17 = vmul.f32 %v1523_v15, %v426_v16  ;;  %v430_v26 = vsel %vm429_vm6, %v426_v16, 0.0  ;;  %v312_v16 = vld [vmem:[#allocation2 + $0x50] sm:$0xff] }
 0x2b0   : > { %v431_v27 = vrot.slane %v430_v26, 4 }
 0x2b1   : > { %v452_v18 = vsel %vm451_vm5, %v450_v17, 0.0 }
 0x2b2   : > { %v453_v19 = vrot.slane %v452_v18, 4  ;;  %v432_v29 = vadd.f32 %v431_v27, %v430_v26 }
 0x2b4   : > { %v454_v20 = vadd.f32 %v453_v19, %v452_v18  ;;  %v433_v31 = vrot.slane %v432_v29, 2 }
 0x2b6   : > { %v455_v21 = vrot.slane %v454_v20, 2  ;;  %v434_v33 = vadd.f32 %v433_v31, %v432_v29 }
 0x2b8   : > { %v456_v22 = vadd.f32 %v455_v21, %v454_v20  ;;  %v435_v35 = vrot.slane %v434_v33, 1 }
 0x2ba   : > { %v457_v23 = vrot.slane %v456_v22, 1  ;;  %v436_v37 = vadd.f32 %v435_v35, %v434_v33 }
 0x2bc   : > { %v458_v24 = vadd.f32 %v457_v23, %v456_v22  ;;  %v444_v39 = vmul.f32 %v1529_v38, %v436_v37 }
 0x2be   : > { %460 = vrot.lane.b32.xlu1 %v458_v24, %s1452_s14 }
 0x330   : > { %v461_v40 = vpop.permute.xlu1 %460 }
 0x331   : > { %v463_v41 = vadd.f32 %v461_v40, %v444_v39  ;;  %v1455_v39 = vmov 0.0  }
 0x332   : > { %v1565_v40 = vsel %vm293_vm12, 0.1, %v1455_v39  ;;  %v1573_v46 = vsel %vm297_vm10, 0.17355372, %v1455_v39 }
 0x333   : > { %v464_v42 = vmax.f32 %v463_v41, 0.0 }
 0x335   : > { %v490_v43 = vmul.f32 0.125, %v464_v42 }
 0x337   : > { %496 = vrot.lane.b32.xlu2 %v490_v43, %s1454_s15  ;;  %v1456_v43 = vmov 1e+09  }
 0x338   : > { %v1570_v44 = vsel %vm295_vm9, 2.0, %v1456_v43  ;;  %v1576_v48 = vsel %vm297_vm10, 0.8888889, %v1456_v43  ;;  %vm1203_vm9 = vcmask 1045504   ;;  %vm1205_vm10 = vcmask 1046528  }
 0x33f   : > { %483 = vperm.xlu2 %1393, %v464_v42  }
 0x391   : > { %v497_v45 = vpop.permute.xlu2 %496 }
 0x392   : > { %1360 = vpush %v497_v45 }
 0x399   : > { %v484_v59 = vpop.permute.xlu2 %483 }
 0x39a   : > { %v489_v60 = vmul.f32 %v487_v58, %v484_v59 }
 0x39c   : > { %v491_v62 = vsub.f32 0.0, %v489_v60 }
 0x39e   : > { %v492_v1 = vperm.slane %v491_v62, 0 }
 0x3a0   : > { %v493_v2 = vsel %vm293_vm12, %v492_v1, 0.0 }
 0x3a1   : > { %v494_v3 = vadd.f32 %v493_v2, %v1504_v0  ;;  %v309_v0 = vld [vmem:[#allocation2 + $0x38] sm:$0xff] }
 0x3c3   : > { %s1361_s16 = spop %1360 }
 0x3c4   : > { %v499_v4 = vstv %s1361_s16 }
 0x3c5   : > { %v501_v6 = vsel %vm301_vm13, %v499_v4, 0.0 }
 0x3c6   : > { %v502_v7 = vadd.f32 %v501_v6, %v494_v3 }
 0x3c8   : > { %503 = vxpose.xlu1.b32.start.end [1/1] (short) (narrow) %v502_v7, 8 }
 0x46c   : > { %v519_v9 = vpop.trf.xlu1 }
 0x46d   : > { %1327 = vmatmul.msk.f32.vlgmr.msra.gmra.mxu3 %vm345_vm1, %v519_v9 }
 0x4f0   : > { %v558_v11 = vpop.f32.mrf.mxu3 }
 0x4f1   : > { %v582_v12 = vadd.f32 %v581_v10, %v558_v11 }
 0x4f3   : > { %585 = vrot.lane.b32.xlu2 %v582_v12, %s1450_s6 }
 0x519   : > { %611 = vxpose.xlu2.b32.start [1/4] (short) (narrow) %v309_v0, 16 }
 0x521   : > { %612 = vxpose.xlu2.b32.cont [2/4] (short) (narrow) %v310_v13, 16 }
 0x529   : > { %613 = vxpose.xlu2.b32.cont [3/4] (short) (narrow) %v311_v14, 16 }
 0x531   : > { %614 = vxpose.xlu2.b32.end [4/4] (short) (narrow) %v312_v16, 16 }
 0x54d   : > { %v586_v17 = vpop.permute.xlu2 %585 }
 0x54e   : > { %1330 = vmatpush.msk.msrb.mxu1 %vm380_vm2, %v586_v17 }
 0x54f   : > { %1331 = vmatmul.msk.f32.vlgmr.msrb.gmra.mxu1 %vm376_vm3, %v1514_v5 }
 0x5b2   : > { %v627_v21 = vpop.trf.xlu2 }
 0x5ba   : > { %v628_v22 = vpop.trf.xlu2 }
 0x5cc   : > { %v606_v18 = vpop.f32.mrf.mxu1 }
 0x5cd   : > { %v609_v19 = vadd.f32 %v606_v18, %v582_v12 }
 0x5cf   : > { %v610_v20 = vmax.f32 %v609_v19, 0.0 }
 0x5d1   : > { %1332 = vmatpush.xpose.msk.msrb.mxu3 %vm405_vm4, %v610_v20 }
 0x5d4   : > { %1333 = vmatmul.msk.f32.vlgmr.msrb.gmra.mxu3 %vm405_vm4, %v627_v21 }
 0x5d5   : > { %1335 = vmatpush.xpose.msk.msra.mxu3 %vm376_vm3, %v1514_v5 }
 0x5dc   : > { %1334 = vmatmul.msk.f32.gmra.mxu3 %vm405_vm4, %v628_v22 }
 0x657   : > { %v669_v23 = vpop.f32.mrf.mxu3 }
 0x658   : > { %v678_v25 = vrot.slane %v669_v23, 5 }
 0x65f   : > { %v672_v24 = vpop.f32.mrf.mxu3 }
 0x660   : > { %v679_v26 = vrot.slane %v672_v24, 5 }
 0x662   : > { %v680_v27 = vsel %vm677_vm14, %v678_v25, %v679_v26 }
 0x663   : > { %1336 = vmatmul.msk.f32.vlgmr.msra.gmra.mxu3 %vm376_vm3, %v680_v27 }
 0x6e6   : > { %v700_v28 = vpop.f32.mrf.mxu3 }
 0x6e7   : > { %v703_v29 = vadd.f32 %v700_v28, %v669_v23  ;;  %v727_v28 = vld [vmem:[#allocation2 + $0x88] sm:$0x1f] }
 0x6e8   : > { %1343 = vmatpush.msk.msrb.mxu0 %vm349_vm0, %v727_v28 }
 0x6e9   : > { %v704_v30 = vadd.f32 %v703_v29, %v502_v7  ;;  %v726_v29 = vld [vmem:[#allocation2 + $0x80] sm:$0xf] }
 0x6eb   : > { %v706_v31 = vsel %vm705_vm15, %v704_v30, 0.0 }
 0x6ec   : > { %707 = vadd.xlane.f32.xlu1 %v706_v31 }
 0x75f   : > { %v708_v33 = vpop.xlane.xlu1 %707 }
 0x760   : > { %v1337_v34 = vadd.f32 -1.0, %v708_v33 }
 0x762   : > { %vm710_vm7 = vcmp.gt.f32.partialorder %v1337_v34, 0.0  ;;  %v711_v35 = vmul.f32 0.25, %v1337_v34 }
 0x764   : > { %v712_v36 = vsel %vm710_vm7, %v711_v35, 0.0 }
 0x765   : > { %v713_v37 = vperm.slane %v712_v36, 0 }
 0x767   : > { %v714_v41 = vsel %vm300_vm8, %v713_v37, 0.0 }
 0x768   : > { %v715_v42 = vsub.f32 %v704_v30, %v714_v41 }
 0x76a   : > { %v716_v45 = vmax.f32 %v715_v42, %v1565_v40 }
 0x76c   : > { %v717_v47 = vmin.f32 %v716_v45, %v1570_v44 }
 0x76e   : > { %v718_v49 = vmax.f32 %v717_v47, %v1573_v46 }
 0x770   : > { %v1580_v50 = vmin.f32 %v718_v49, %v1576_v48 }
 0x772   : > { %732 = vxpose.xlu2.b32.start.end [1/1] (short) (narrow) %v1580_v50, 8  ;;  %v862_v20 = vadd.f32 1.0, %v1580_v50 }
 0x774   : > { %1399 = vrcp.f32 %v862_v20  ;;  %v874_v27 = vand.u32 2147483648, %v862_v20 }
 0x776   : > { %v875_v31 = vor.u32 1.1754944e-38, %v874_v27 }
 0x77a   : > { %v1400_v22 = vpop.eup %1399 }
 0x77b   : > { %v864_v23 = vmul.f32 %v1400_v22, %v862_v20 }
 0x77d   : > { %v865_v24 = vsub.f32 1.0, %v864_v23 }
 0x77f   : > { %v866_v25 = vmul.f32 %v1400_v22, %v865_v24 }
 0x781   : > { %v867_v26 = vadd.f32 %v1400_v22, %v866_v25 }
 0x80b   : > { %v748_v51 = vpop.trf.xlu2 }
 0x80c   : > { %1339 = vmatmul.msk.f32.vlgmr.msra.gmra.mxu0 %vm345_vm1, %v748_v51  ;;  %v728_v51 = vld [vmem:[#allocation2 + $0x90] sm:$0xff] }
 0x80d   : > { %1352 = vmatpush.xpose.msk.msra.mxu0 %vm376_vm3, %v1514_v5 }
 0x889   : > { %v787_v52 = vpop.f32.mrf.mxu0 }
 0x88a   : > { %791 = vrot.lane.b32.xlu2 %v787_v52, %s1450_s6 }
 0x8e4   : > { %v792_v54 = vpop.permute.xlu2 %791 }
 0x8e5   : > { %1340 = vmatpush.msk.msra.mxu1 %vm380_vm2, %v792_v54  ;;  %v731_v54 = vld [vmem:[#allocation2 + $0xa8] sm:$0xff] }
 0x8e6   : > { %1341 = vmatmul.msk.f32.vlgmr.msra.gmra.mxu1 %vm376_vm3, %v1514_v5 }
 0x8e7   : > { %1345 = vmatpush.msk.msrb.mxu1 %vm380_vm2, %v726_v29 }
 0x8e9   : > { %1355 = vmatpush.msk.msra.mxu1 %vm380_vm2, %v1514_v5 }
 0x8ee   : > { %1346 = vmatmul.msk.f32.vlgmr.msrb.gmra.mxu1 %vm376_vm3, %v1514_v5 }
 0x963   : > { %v812_v58 = vpop.f32.mrf.mxu1 }
 0x964   : > { %v815_v59 = vadd.f32 %v812_v58, %v787_v52  ;;  %v729_v52 = vld [vmem:[#allocation2 + $0x98] sm:$0xff] }
 0x966   : > { %v816_v60 = vmax.f32 %v815_v59, 0.0 }
 0x968   : > { %1342 = vmatmul.msk.f32.vlgmr.msrb.gmra.mxu2 %vm405_vm4, %v816_v60 }
 0x96b   : > { %v978_v55 = vpop.f32.mrf.mxu1 }
 0x9eb   : > { %v837_v61 = vpop.f32.mrf.mxu2 }
 0x9ec   : > { %v848_v62 = vmul.f32 %v837_v61, %v1523_v15  ;;  %v840_v9 = vsel %vm429_vm6, %v837_v61, 0.0  ;;  %vm868_vm6 = vweird.f32 %v862_v20 }
 0x9ed   : > { %v841_v10 = vrot.slane %v840_v9, 4 }
 0x9ee   : > { %v849_v1 = vsel %vm451_vm5, %v848_v62, 0.0  ;;  %vm869_vm5 = vweird.f32 %v1400_v22 }
 0x9ef   : > { %v850_v2 = vrot.slane %v849_v1, 4  ;;  %v842_v11 = vadd.f32 %v841_v10, %v840_v9  ;;  %vm870_vm11 = vmor %vm868_vm6, %vm869_vm5 }
 0x9f0   : > { %v871_v30 = vsel %vm870_vm11, %v1400_v22, %v867_v26 }
 0x9f1   : > { %v851_v3 = vadd.f32 %v850_v2, %v849_v1  ;;  %v843_v12 = vrot.slane %v842_v11, 2 }
 0x9f3   : > { %v852_v4 = vrot.slane %v851_v3, 2  ;;  %v844_v0 = vadd.f32 %v843_v12, %v842_v11 }
 0x9f5   : > { %v853_v6 = vadd.f32 %v852_v4, %v851_v3  ;;  %v845_v13 = vrot.slane %v844_v0, 1 }
 0x9f7   : > { %v854_v7 = vrot.slane %v853_v6, 1  ;;  %v846_v14 = vadd.f32 %v845_v13, %v844_v0 }
 0x9f9   : > { %v855_v8 = vadd.f32 %v854_v7, %v853_v6  ;;  %v847_v15 = vmul.f32 %v846_v14, %v1529_v38  ;;  %v872_v38 = vand.u32 2147483647, %v862_v20 }
 0x9fb   : > { %857 = vrot.lane.b32.xlu0 %v855_v8, %s1452_s14  ;;  %vm873_vm7 = vcmp.eq.f32.partialorder %v872_v38, 8.507059e+37 }
 0x9fc   : > { %v876_v32 = vsel %vm873_vm7, %v875_v31, %v871_v30 }
 0x9fd   : > { %v877_v33 = vmul.f32 0.25, %v876_v32 }
 0x9ff   : > { %v884_v35 = vrot.slane %v877_v33, 1 }
 0xa6d   : > { %v858_v16 = vpop.permute.xlu0 %857 }
 0xa6e   : > { %v860_v17 = vadd.f32 %v858_v16, %v847_v15 }
 0xa70   : > { %v861_v18 = vmax.f32 %v860_v17, 0.0 }
 0xa72   : > { %v887_v19 = vmul.f32 0.125, %v861_v18 }
 0xa74   : > { %893 = vrot.lane.b32.xlu0 %v887_v19, %s1454_s15 }
 0xa7c   : > { %880 = vperm.xlu0 %1394, %v861_v18  }
 0xae6   : > { %v894_v21 = vpop.permute.xlu0 %893 }
 0xae7   : > { %1362 = vpush %v894_v21 }
 0xaee   : > { %v881_v34 = vpop.permute.xlu0 %880 }
 0xaef   : > { %v886_v36 = vmul.f32 %v884_v35, %v881_v34  ;;  %v288_v35 = vld [vmem:[%s273_s21] sm:$0x1] }
 0xaf1   : > { %v888_v37 = vsub.f32 0.0, %v886_v36 }
 0xaf3   : > { %v889_v39 = vperm.slane %v888_v37, 0 }
 0xaf5   : > { %v890_v41 = vsel %vm293_vm12, %v889_v39, 0.0 }
 0xaf6   : > { %v891_v42 = vadd.f32 %v890_v41, %v1580_v50 }
 0xb18   : > { %s1363_s17 = spop %1362 }
 0xb19   : > { %v896_v43 = vstv %s1363_s17 }
 0xb1a   : > { %v898_v45 = vsel %vm301_vm13, %v896_v43, 0.0 }
 0xb1b   : > { %v899_v47 = vadd.f32 %v898_v45, %v891_v42 }
 0xb1d   : > { %900 = vxpose.xlu0.b32.start.end [1/1] (short) (narrow) %v899_v47, 8 }
 0xb25   : > { %1008 = vxpose.xlu0.b32.start [1/4] (short) (narrow) %v728_v51, 16 }
 0xb2d   : > { %1009 = vxpose.xlu0.b32.cont [2/4] (short) (narrow) %v729_v52, 16 }
 0xb35   : > { %1010 = vxpose.xlu0.b32.cont [3/4] (short) (narrow) %v730_v53, 16 }
 0xb3d   : > { %1011 = vxpose.xlu0.b32.end [4/4] (short) (narrow) %v731_v54, 16 }
 0xbc1   : > { %v916_v49 = vpop.trf.xlu0 }
 0xbc2   : > { %1344 = vmatmul.msk.f32.vlgmr.msrb.gmra.mxu0 %vm345_vm1, %v916_v49 }
 0xbc9   : > { %v1024_v61 = vpop.trf.xlu0 }
 0xbd1   : > { %v1025_v62 = vpop.trf.xlu0 }
 0xc3f   : > { %v955_v56 = vpop.f32.mrf.mxu0 }
 0xc40   : > { %v979_v50 = vadd.f32 %v978_v55, %v955_v56 }
 0xc42   : > { %982 = vrot.lane.b32.xlu1 %v979_v50, %s1450_s6 }
 0xcb4   : > { %v983_v57 = vpop.permute.xlu1 %982 }
 0xcb5   : > { %1347 = vmatpush.msk.msrb.mxu3 %vm380_vm2, %v983_v57 }
 0xcb6   : > { %1348 = vmatmul.msk.f32.vlgmr.msrb.gmra.mxu3 %vm376_vm3, %v1514_v5 }
 0xd39   : > { %v1003_v58 = vpop.f32.mrf.mxu3 }
 0xd3a   : > { %v1006_v59 = vadd.f32 %v1003_v58, %v979_v50 }
 0xd3c   : > { %v1007_v60 = vmax.f32 %v1006_v59, 0.0 }
 0xd3e   : > { %1349 = vmatpush.xpose.msk.msra.mxu2 %vm405_vm4, %v1007_v60 }
 0xd41   : > { %1350 = vmatmul.msk.f32.vlgmr.msra.gmra.mxu2 %vm405_vm4, %v1024_v61 }
 0xd49   : > { %1351 = vmatmul.msk.f32.gmra.mxu2 %vm405_vm4, %v1025_v62 }
 0xdc4   : > { %v1066_v1 = vpop.f32.mrf.mxu2 }
 0xdc5   : > { %v1074_v3 = vrot.slane %v1066_v1, 5 }
 0xdcc   : > { %v1069_v2 = vpop.f32.mrf.mxu2 }
 0xdcd   : > { %v1075_v4 = vrot.slane %v1069_v2, 5 }
 0xdcf   : > { %v1076_v6 = vsel %vm677_vm14, %v1074_v3, %v1075_v4 }
 0xdd0   : > { %1353 = vmatmul.msk.f32.vlgmr.msra.gmra.mxu0 %vm376_vm3, %v1076_v6 }
 0xe4d   : > { %v1096_v5 = vpop.f32.mrf.mxu0 }
 0xe4e   : > { %v1099_v7 = vadd.f32 %v1096_v5, %v1066_v1 }
 0xe50   : > { %v1100_v8 = vadd.f32 %v1099_v7, %v899_v47 }
 0xe52   : > { %v1101_v9 = vsel %vm705_vm15, %v1100_v8, 0.0 }
 0xe53   : > { %1102 = vadd.xlane.f32.xlu1 %v1101_v9 }
 0xec6   : > { %v1103_v10 = vpop.xlane.xlu1 %1102 }
 0xec7   : > { %v1354_v11 = vadd.f32 -1.0, %v1103_v10 }
 0xec9   : > { %vm1105_vm1 = vcmp.gt.f32.partialorder %v1354_v11, 0.0  ;;  %v1106_v12 = vmul.f32 0.25, %v1354_v11 }
 0xecb   : > { %v1107_v0 = vsel %vm1105_vm1, %v1106_v12, 0.0 }
 0xecc   : > { %v1108_v13 = vperm.slane %v1107_v0, 0 }
 0xece   : > { %v1109_v14 = vsel %vm300_vm8, %v1108_v13, 0.0 }
 0xecf   : > { %v1110_v15 = vsub.f32 %v1100_v8, %v1109_v14 }
 0xed1   : > { %v1111_v16 = vmax.f32 %v1110_v15, %v1565_v40 }
 0xed3   : > { %v1112_v17 = vmin.f32 %v1111_v16, %v1570_v44 }
 0xed5   : > { %v1113_v18 = vmax.f32 %v1112_v17, %v1573_v46 }
 0xed7   : > { %v1114_v19 = vmin.f32 %v1113_v18, %v1576_v48 }
 0xed9   : > { %v1115_v20 = vmax.f32 %v1114_v19, 0.0 }
 0xedb   : > { %1356 = vmatmul.msk.f32.vlgmr.msra.gmra.mxu1 %vm376_vm3, %v1115_v20  ;;  %v1116_v21 = vadd.f32 1.0, %v1115_v20  ;;  %v1135_v36 = vrot.slane %v1115_v20, 1  ;;  %vm1145_vm14 = vcmp.eq.f32.partialorder %v1115_v20, inf  ;;  %v1148_v41 = vand.u32 2147483648, %v1115_v20 }
 0xedc   : > { %v1151_v42 = vmul.f32 %v1115_v20, %v288_v35  ;;  %vm1147_vm8 = vcmp.eq.f32.partialorder %v1115_v20, 0.0  ;;  %v1178_v51 = vrot.slane %v1115_v20, 2 }
 0xedd   : > { %v1117_v22 = vmul.f32 %v1116_v21, %v1116_v21 }
 0xede   : > { %v1187_v57 = vrot.slane %v1151_v42, 7 }
 0xedf   : > { %1401 = vrcp.f32 %v1117_v22  ;;  %v1129_v46 = vand.u32 2147483648, %v1117_v22  ;;  %vm1123_vm4 = vweird.f32 %v1117_v22  ;;  %v1127_v28 = vand.u32 2147483647, %v1117_v22 }
 0xee0   : > { %1403 = vrsqrt.f32 %v1115_v20 }
 0xee1   : > { %v1130_v30 = vor.u32 1.1754944e-38, %v1129_v46  ;;  %vm1128_vm13 = vcmp.eq.f32.partialorder %v1127_v28, 8.507059e+37 }
 0xee5   : > { %v1402_v23 = vpop.eup %1401 }
 0xee6   : > { %v1404_v24 = vpop.eup %1403  ;;  %v1119_v63 = vmul.f32 %v1402_v23, %v1117_v22  ;;  %vm1124_vm2 = vweird.f32 %v1402_v23 }
 0xee7   : > { %v1139_v25 = vmul.f32 %v1404_v24, %v1115_v20  ;;  %vm1125_vm12 = vmor %vm1123_vm4, %vm1124_vm2 }
 0xee8   : > { %v1120_v26 = vsub.f32 1.0, %v1119_v63 }
 0xee9   : > { %v1140_v40 = vmul.f32 %v1404_v24, %v1139_v25 }
 0xeea   : > { %v1121_v27 = vmul.f32 %v1402_v23, %v1120_v26 }
 0xeeb   : > { %v1141_v44 = vmul.f32 0.5, %v1140_v40 }
 0xeec   : > { %v1122_v38 = vadd.f32 %v1402_v23, %v1121_v27 }
 0xeed   : > { %v1142_v48 = vsub.f32 1.5, %v1141_v44 }
 0xeee   : > { %v1126_v29 = vsel %vm1125_vm12, %v1402_v23, %v1122_v38 }
 0xeef   : > { %v1143_v31 = vmul.f32 %v1404_v24, %v1142_v48  ;;  %v1131_v32 = vsel %vm1128_vm13, %v1130_v30, %v1126_v29 }
 0xef0   : > { %v1133_v34 = vsub.f32 1.0, %v1131_v32 }
 0xef1   : > { %v1144_v33 = vmul.f32 %v1143_v31, %v1115_v20 }
 0xef2   : > { %v1137_v39 = vsub.f32 %v1133_v34, %v1135_v36 }
 0xef3   : > { %v1146_v37 = vsel %vm1145_vm14, %v1115_v20, %v1144_v33 }
 0xef4   : > { %v1149_v45 = vsel %vm1147_vm8, %v1148_v41, %v1146_v37  ;;  %v1191_v52 = vrot.slane %v1137_v39, 5 }
 0xef5   : > { %v1150_v53 = vsub.f32 %v1149_v45, %v1135_v36 }
 0xef6   : > { %v1202_v58 = vsel %vm349_vm0, %v1115_v20, %v1191_v52 }
 0xef7   : > { %v1194_v59 = vrot.slane %v1150_v53, 5 }
 0xef9   : > { %v1204_v62 = vsel %vm1203_vm9, %v1202_v58, %v1194_v59 }
 0xf58   : > { %v1173_v43 = vpop.f32.mrf.mxu1 }
 0xf59   : > { %v1176_v47 = vsub.f32 %v1173_v43, %v1151_v42 }
 0xf5b   : > { %v1177_v49 = vadd.f32 1.0, %v1176_v47 }
 0xf5d   : > { %v1180_v54 = vmul.f32 %v1178_v51, %v1177_v49  ;;  %v1183_v55 = vrot.slane %v1177_v49, 7 }
 0xf5f   : > { %v1181_v56 = vsub.f32 %v1151_v42, %v1180_v54  ;;  %v1185_v50 = vmul.f32 %v1183_v55, %v1115_v20 }
 0xf61   : > { %v1189_v60 = vsub.f32 %v1185_v50, %v1187_v57  ;;  %v1197_v61 = vrot.slane %v1181_v56, 1 }
 0xf63   : > { %v1200_v1 = vrot.slane %v1189_v60, 1  ;;  %v1206_v2 = vsel %vm1205_vm10, %v1204_v62, %v1197_v61 }
 0xf64   : > { %1207 = vst.msk [vmem:[%s286_s26] sm:$0xff] %vm376_vm3, %v1206_v2 }
 0xf65   : > { %1208 = vst.msk [vmem:[%s286_s26 + $0x8] sm:$0x1] %vm705_vm15, %v1200_v1 }
 0xf66 PF: > { %s16_s18 = sadd.s32 1, %s1445_s18  }
 0xf67   : > { %p13_p7 = scmp.ge.s32.totalorder %s16_s18, 4  }
 0xf69   :  { %15 = sbr.rel (!%p13_p7) target bundleno = 1 (0x1), region = 85 }
 0xf6e   :  { %1230 = vsyncpa [#allocation3], 1 }
 0xf6f   :  { %1232 = vsyncpa [#allocation3 + $0x1], 1 }

</bundles_post_ra>
